<compile_context>
chip_gen: v7x
topology: tpu7x:2x2x1
jax: 0.10.0
libtpu: 0.0.40
codegen_flags: <defaults>
</compile_context>

<pallas_src>
import functools

import jax
import jax.numpy as jnp
from jax import lax
from jax.experimental import pallas as pl
from jax.experimental.pallas import tpu as pltpu


def _round_up(x, m):
    return ((x + m - 1) // m) * m


# ---------------------------------------------------------------------------
# Pallas kernels: (O, K) @ (K, tm) matmul + bias + PReLU (+ fused residual).
# ---------------------------------------------------------------------------
def _mm_bias_prelu_kernel(p_ref, w_ref, b_ref, a_ref, o_ref):
    # w: (O, K) bf16, p: (K, tm) bf16, b: (O, 1) f32, a: (1,) f32 in SMEM.
    acc = jnp.dot(w_ref[...], p_ref[...], preferred_element_type=jnp.float32)
    acc = acc + b_ref[...]
    alpha = a_ref[0]
    o_ref[...] = jnp.where(acc >= 0.0, acc, alpha * acc)


def _mm_bias_prelu_res_kernel(p_ref, w_ref, b_ref, a_ref, r_ref, o_ref, *, sign):
    acc = jnp.dot(w_ref[...], p_ref[...], preferred_element_type=jnp.float32)
    acc = acc + b_ref[...]
    alpha = a_ref[0]
    act = jnp.where(acc >= 0.0, acc, alpha * acc)
    o_ref[...] = act + sign * r_ref[...]          # fused (+h0) or (-x) residual


# ---------------------------------------------------------------------------
# Wrapper around pallas_call
# ---------------------------------------------------------------------------
def _matmul_bias_prelu(patches_km, w_ok, bias, alpha, residual=None,
                       res_sign=1.0, tm=512):
    """Returns f32 (O, M_pad) = PReLU(w_ok @ patches_km + bias) [+ sign*residual]."""
    K, M = patches_km.shape
    O = w_ok.shape[0]
    tm = min(tm, _round_up(M, 128))          # lane-dense tiles, several grid steps if big
    m_pad = _round_up(M, tm)

    patches_km = patches_km.astype(jnp.bfloat16)
    w_ok = w_ok.astype(jnp.bfloat16)
    if m_pad != M:
        patches_km = jnp.pad(patches_km, ((0, 0), (0, m_pad - M)))
    b2 = bias.astype(jnp.float32).reshape(O, 1)
    a1 = jnp.asarray(alpha, jnp.float32).reshape(1)

    grid = (m_pad // tm,)
    in_specs = [
        pl.BlockSpec((K, tm), lambda i: (0, i)),   # patches tile
        pl.BlockSpec((O, K), lambda i: (0, 0)),    # weights (resident)
        pl.BlockSpec((O, 1), lambda i: (0, 0)),    # bias (resident)
        pl.BlockSpec(memory_space=pltpu.MemorySpace.SMEM),   # alpha scalar
    ]
    out_spec = pl.BlockSpec((O, tm), lambda i: (0, i))
    cp = pltpu.CompilerParams(dimension_semantics=("parallel",))

    if residual is None:
        return pl.pallas_call(
            _mm_bias_prelu_kernel,
            out_shape=jax.ShapeDtypeStruct((O, m_pad), jnp.float32),
            grid=grid, in_specs=in_specs, out_specs=out_spec,
            compiler_params=cp,
        )(patches_km, w_ok, b2, a1)

    residual = residual.astype(jnp.float32)
    rM = residual.shape[1]
    if rM < m_pad:
        residual = jnp.pad(residual, ((0, 0), (0, m_pad - rM)))
    elif rM > m_pad:
        residual = residual[:, :m_pad]
    kern = functools.partial(_mm_bias_prelu_res_kernel, sign=res_sign)
    return pl.pallas_call(
        kern,
        out_shape=jax.ShapeDtypeStruct((O, m_pad), jnp.float32),
        grid=grid,
        in_specs=in_specs + [pl.BlockSpec((O, tm), lambda i: (0, i))],
        out_specs=out_spec, compiler_params=cp,
    )(patches_km, w_ok, b2, a1, residual)


# ---------------------------------------------------------------------------
# Conv2d (stride-s) as im2col + Pallas matmul, patches in (K, M) layout
# ---------------------------------------------------------------------------
def _im2col_conv(x, kh, kw, stride, pad):
    # x: (N, C, H, W) -> (C*kh*kw, N*Ho*Wo); K order (c, i, j), M order (n, oh, ow)
    N, C, H, W = x.shape
    xp = jnp.pad(x, ((0, 0), (0, 0), (pad, pad), (pad, pad)))
    Ho = (H + 2 * pad - kh) // stride + 1
    Wo = (W + 2 * pad - kw) // stride + 1
    cols = []
    for i in range(kh):
        for j in range(kw):
            sl = xp[:, :,
                    i:i + (Ho - 1) * stride + 1:stride,
                    j:j + (Wo - 1) * stride + 1:stride]          # (N, C, Ho, Wo)
            cols.append(sl)
    pat = jnp.stack(cols, axis=2)                                # (N, C, kh*kw, Ho, Wo)
    pat = pat.transpose(1, 2, 0, 3, 4).reshape(C * kh * kw, N * Ho * Wo)
    return pat, Ho, Wo


def conv2d_prelu(x, w, b, alpha, stride, pad, residual=None, res_sign=1.0):
    # w: (O, C, kh, kw).  Returns ((O, N*Ho*Wo) channel-first flat output, (N, Ho, Wo)).
    O, C, kh, kw = w.shape
    N = x.shape[0]
    patches, Ho, Wo = _im2col_conv(x, kh, kw, stride, pad)
    wmat = w.reshape(O, C * kh * kw)
    out = _matmul_bias_prelu(patches, wmat, b, alpha,
                             residual=residual, res_sign=res_sign)
    return out[:, :N * Ho * Wo], (N, Ho, Wo)


# ---------------------------------------------------------------------------
# ConvTranspose2d (k == 2*s) via sub-pixel decomposition + Pallas matmul
# ---------------------------------------------------------------------------
def _subpixel_weight_bias(wt, b, s, p):
    # wt: (C_in, C_out, k, k) PyTorch ConvTranspose2d layout.
    C_in, C_out, k, k2 = wt.shape
    assert k == 2 * s and k2 == k and 0 <= p < s, "sub-pixel path needs k == 2*s, 0<=p<s"
    wt_r = wt.reshape(C_in, C_out, 2, s, 2, s)        # (ci, co, mh, rh, mw, rw)
    wt_r = wt_r[:, :, ::-1, :, ::-1, :]               # window row wr = 1 - mh
    rperm = [(v + p) % s for v in range(s)]           # phase v -> kernel remainder r
    wt_r = jnp.take(wt_r, jnp.asarray(rperm), axis=3)
    wt_r = jnp.take(wt_r, jnp.asarray(rperm), axis=5)
    # (ci, co, wr, v, wc, v') -> (v, v', co, ci, wr, wc) -> (s*s*C_out, 4*C_in)
    w_ph = wt_r.transpose(3, 5, 1, 0, 2, 4).reshape(s * s * C_out, C_in * 4)
    b_ph = jnp.tile(b, s * s)                         # bias per (v, v', co)
    return w_ph, b_ph


def _im2col_deconv(x):
    # 2x2 sliding windows of x padded by 1 -> (4*C, N*(H+1)*(W+1));
    # K order (c, wr, wc), M order (n, a, b).
    N, C, H, W = x.shape
    xp = jnp.pad(x, ((0, 0), (0, 0), (1, 1), (1, 1)))
    cols = []
    for wr in range(2):
        for wc in range(2):
            cols.append(xp[:, :, wr:wr + H + 1, wc:wc + W + 1])   # (N, C, H+1, W+1)
    pat = jnp.stack(cols, axis=2)                     # (N, C, 4, H+1, W+1)
    pat = pat.transpose(1, 2, 0, 3, 4).reshape(C * 4, N * (H + 1) * (W + 1))
    return pat


def conv_transpose2d_prelu(x, wt, b, alpha, s, p, residual_raw=None):
    # Returns the raw phase-layout output (s*s*C_out, M_pad) and assembly dims.
    N, C, H, W = x.shape
    C_out = wt.shape[1]
    patches = _im2col_deconv(x)                       # (4C, N*(H+1)*(W+1))
    w_ph, b_ph = _subpixel_weight_bias(wt, b, s, p)
    raw = _matmul_bias_prelu(patches, w_ph, b_ph, alpha,
                             residual=residual_raw, res_sign=1.0)
    return raw, (N, C_out, H, W)


def _assemble_deconv(raw, dims, s, p):
    # raw: (s*s*C_out, M_pad); O index (v, v', co), M index (n, a, b).
    N, C_out, H, W = dims
    M = N * (H + 1) * (W + 1)
    out_r = raw[:, :M].reshape(s, s, C_out, N, H + 1, W + 1)
    e = [(v + p) // s for v in range(s)]              # per-phase window offset (0 or 1)
    rows = []
    for v in range(s):
        cols = []
        for vp in range(s):
            cols.append(out_r[v, vp, :, :, e[v]:e[v] + H, e[vp]:e[vp] + W])
        rows.append(jnp.stack(cols, axis=-1))         # (C_out, N, H, W, s)
    y = jnp.stack(rows, axis=3)                       # (C_out, N, H, s, W, s)
    return y.transpose(1, 0, 2, 3, 4, 5).reshape(N, C_out, s * H, s * W)


# ---------------------------------------------------------------------------
# UpBlock forward (Pallas)
# ---------------------------------------------------------------------------
def up_block(x, params, stride=4, pad=2):
    (w1, b1, a1), (w2, b2, a2), (w3, b3, a3) = params
    N, C, H, W = x.shape

    # up_conv1: ConvTranspose2d + PReLU (sub-pixel)
    h0_raw, dims = conv_transpose2d_prelu(x, w1, b1, a1, stride, pad)
    h0 = _assemble_deconv(h0_raw, dims, stride, pad)            # (N, C, sH, sW)

    # up_conv2: Conv2d + PReLU, with (l0 - x) fused into the epilogue
    x_cm = x.transpose(1, 0, 2, 3).reshape(C, N * H * W)        # channel-first flat
    d_cm, (_, Ho, Wo) = conv2d_prelu(h0, w2, b2, a2, stride, pad,
                                     residual=x_cm, res_sign=-1.0)
    d = d_cm.reshape(C, N, Ho, Wo).transpose(1, 0, 2, 3)        # (N, C, H, W)

    # up_conv3: ConvTranspose2d + PReLU, with (+ h0) fused in phase space
    h1p_raw, dims3 = conv_transpose2d_prelu(d, w3, b3, a3, stride, pad,
                                            residual_raw=h0_raw)
    return _assemble_deconv(h1p_raw, dims3, stride, pad)        # h1 + h0


# ---------------------------------------------------------------------------
# Pure-JAX reference (correctness check)
# ---------------------------------------------------------------------------
def _prelu(y, a):
    return jnp.where(y >= 0.0, y, a * y)


def _ref_conv(x, w, b, a, s, p):
    y = lax.conv_general_dilated(
        x, w, window_strides=(s, s), padding=[(p, p), (p, p)],
        dimension_numbers=('NCHW', 'OIHW', 'NCHW'),
        precision=lax.Precision.HIGHEST)
    return _prelu(y + b.reshape(1, -1, 1, 1), a)


def _ref_deconv(x, wt, b, a, s, p):
    k = wt.shape[2]
    w_eq = jnp.flip(wt, axis=(2, 3)).transpose(1, 0, 2, 3)
    y = lax.conv_general_dilated(
        x, w_eq, window_strides=(1, 1),
        padding=[(k - 1 - p, k - 1 - p)] * 2, lhs_dilation=(s, s),
        dimension_numbers=('NCHW', 'OIHW', 'NCHW'),
        precision=lax.Precision.HIGHEST)
    return _prelu(y + b.reshape(1, -1, 1, 1), a)


def up_block_ref(x, params, s=4, p=2):
    (w1, b1, a1), (w2, b2, a2), (w3, b3, a3) = params
    h0 = _ref_deconv(x, w1, b1, a1, s, p)
    l0 = _ref_conv(h0, w2, b2, a2, s, p)
    h1 = _ref_deconv(l0 - x, w3, b3, a3, s, p)
    return h1 + h0


# ---------------------------------------------------------------------------
if __name__ == "__main__":
    key = jax.random.PRNGKey(0)
    ks = jax.random.split(key, 7)
    C, k, s, p = 4, 8, 4, 2          # num_filter=4, kernel=8, stride=4, pad=2
    N, H, W = 2, 8, 8

    # deterministic synthetic parameters (shapes match the PyTorch module)
    w1 = 0.05 * jax.random.normal(ks[0], (C, C, k, k), jnp.float32)  # ConvTranspose2d
    b1 = 0.05 * jax.random.normal(ks[1], (C,), jnp.float32)
    w2 = 0.05 * jax.random.normal(ks[2], (C, C, k, k), jnp.float32)  # Conv2d
    b2 = 0.05 * jax.random.normal(ks[3], (C,), jnp.float32)
    w3 = 0.05 * jax.random.normal(ks[4], (C, C, k, k), jnp.float32)  # ConvTranspose2d
    b3 = 0.05 * jax.random.normal(ks[5], (C,), jnp.float32)
    a1 = a2 = a3 = 0.25  # nn.PReLU() default single shared alpha

    params = ((w1, b1, a1), (w2, b2, a2), (w3, b3, a3))
    x = jax.random.normal(ks[6], (N, C, H, W), jnp.float32)

    fwd = jax.jit(lambda xx: up_block(xx, params, s, p))
    out = jax.block_until_ready(fwd(x))
    ref = jax.block_until_ready(up_block_ref(x, params, s, p))

    assert out.shape == (N, C, s * H, s * W), out.shape
    err = float(jnp.max(jnp.abs(out - ref)))
    assert err < 1e-2, f"max abs error {err}"
    print("KERNEL_OK")
</pallas_src>

<mosaic_0001>
module attributes {stable_mosaic.version = 11 : i64} {
  func.func @_mm_bias_prelu_kernel(%arg0: i32, %arg1: memref<16x256xbf16, #tpu.memory_space<vmem>>, %arg2: memref<64x16xbf16, #tpu.memory_space<vmem>>, %arg3: memref<64x1xf32, #tpu.memory_space<vmem>>, %arg4: memref<1xf32, #tpu.memory_space<smem>>, %arg5: memref<64x256xf32, #tpu.memory_space<vmem>>) attributes {dimension_semantics = [#tpu.dimension_semantics<parallel>], iteration_bounds = array<i64: 1>, scalar_prefetch = 0 : i64, scratch_operands = 0 : i64, tpu.core_type = #tpu.core_type<tc>, window_params = [{transform_indices = @transform_0, window_bounds = array<i64: 16, 256>}, {pipeline_mode = #tpu.pipeline_mode<synchronous>, transform_indices = @transform_1, window_bounds = array<i64: 64, 16>}, {pipeline_mode = #tpu.pipeline_mode<synchronous>, transform_indices = @transform_2, window_bounds = array<i64: 64, 1>}, {transform_indices = @transform_3, window_bounds = array<i64: 1>}, {transform_indices = @transform_4, window_bounds = array<i64: 64, 256>}]} {
    %c0 = arith.constant 0 : index
    %c0_0 = arith.constant 0 : index
    %0 = vector.load %arg2[%c0, %c0_0] : memref<64x16xbf16, #tpu.memory_space<vmem>>, vector<64x16xbf16>
    %c0_1 = arith.constant 0 : index
    %c0_2 = arith.constant 0 : index
    %1 = vector.load %arg1[%c0_1, %c0_2] : memref<16x256xbf16, #tpu.memory_space<vmem>>, vector<16x256xbf16>
    %cst = arith.constant dense<0.000000e+00> : vector<64x256xf32>
    %2 = tpu.matmul %0, %1, %cst {dimension_numbers = #tpu.dot_dimension_numbers<[1], [0], [0], [1], [0, 0, 1, 1], [], []>} : vector<64x16xbf16>, vector<16x256xbf16>, vector<64x256xf32> -> vector<64x256xf32>
    %c0_3 = arith.constant 0 : index
    %c0_4 = arith.constant 0 : index
    %3 = vector.load %arg3[%c0_3, %c0_4] : memref<64x1xf32, #tpu.memory_space<vmem>>, vector<64x1xf32>
    %4 = vector.broadcast %3 : vector<64x1xf32> to vector<64x256xf32>
    %5 = arith.addf %2, %4 : vector<64x256xf32>
    %c0_5 = arith.constant 0 : index
    %6 = memref.load %arg4[%c0_5] : memref<1xf32, #tpu.memory_space<smem>>
    %cst_6 = arith.constant 0.000000e+00 : f32
    %7 = vector.broadcast %cst_6 : f32 to vector<64x256xf32>
    %8 = arith.cmpf oge, %5, %7 : vector<64x256xf32>
    %9 = vector.broadcast %6 : f32 to vector<64x256xf32>
    %10 = arith.mulf %9, %5 : vector<64x256xf32>
    %11 = arith.select %8, %5, %10 : vector<64x256xi1>, vector<64x256xf32>
    %c0_7 = arith.constant 0 : index
    %c0_8 = arith.constant 0 : index
    %12 = vector.load %arg5[%c0_7, %c0_8] : memref<64x256xf32, #tpu.memory_space<vmem>>, vector<64x256xf32>
    tpu.vector_store %arg5[%c0_7, %c0_8], %11 {strides = array<i32>} : memref<64x256xf32, #tpu.memory_space<vmem>>, vector<64x256xf32>,
    return
  }
  func.func @transform_0(%arg0: i32) -> (i32, i32) {
    %c0_i32 = arith.constant 0 : i32
    %c0_i32_0 = arith.constant 0 : i32
    return %c0_i32, %arg0 : i32, i32
  }
  func.func @transform_1(%arg0: i32) -> (i32, i32) {
    %c0_i32 = arith.constant 0 : i32
    %c0_i32_0 = arith.constant 0 : i32
    %c0_i32_1 = arith.constant 0 : i32
    return %c0_i32, %c0_i32_0 : i32, i32
  }
  func.func @transform_2(%arg0: i32) -> (i32, i32) {
    %c0_i32 = arith.constant 0 : i32
    %c0_i32_0 = arith.constant 0 : i32
    %c0_i32_1 = arith.constant 0 : i32
    return %c0_i32, %c0_i32_0 : i32, i32
  }
  func.func @transform_3(%arg0: i32) -> i32 {
    %c0_i32 = arith.constant 0 : i32
    %c0_i32_0 = arith.constant 0 : i32
    return %c0_i32 : i32
  }
  func.func @transform_4(%arg0: i32) -> (i32, i32) {
    %c0_i32 = arith.constant 0 : i32
    %c0_i32_0 = arith.constant 0 : i32
    return %c0_i32, %arg0 : i32, i32
  }
}

module attributes {stable_mosaic.version = 11 : i64} {
  func.func @_mm_bias_prelu_res_kernel(%arg0: i32, %arg1: memref<256x128xbf16, #tpu.memory_space<vmem>>, %arg2: memref<4x256xbf16, #tpu.memory_space<vmem>>, %arg3: memref<4x1xf32, #tpu.memory_space<vmem>>, %arg4: memref<1xf32, #tpu.memory_space<smem>>, %arg5: memref<4x128xf32, #tpu.memory_space<vmem>>, %arg6: memref<4x128xf32, #tpu.memory_space<vmem>>) attributes {dimension_semantics = [#tpu.dimension_semantics<parallel>], iteration_bounds = array<i64: 1>, scalar_prefetch = 0 : i64, scratch_operands = 0 : i64, tpu.core_type = #tpu.core_type<tc>, window_params = [{transform_indices = @transform_0, window_bounds = array<i64: 256, 128>}, {pipeline_mode = #tpu.pipeline_mode<synchronous>, transform_indices = @transform_1, window_bounds = array<i64: 4, 256>}, {pipeline_mode = #tpu.pipeline_mode<synchronous>, transform_indices = @transform_2, window_bounds = array<i64: 4, 1>}, {transform_indices = @transform_3, window_bounds = array<i64: 1>}, {transform_indices = @transform_4, window_bounds = array<i64: 4, 128>}, {transform_indices = @transform_5, window_bounds = array<i64: 4, 128>}]} {
    %c0 = arith.constant 0 : index
    %c0_0 = arith.constant 0 : index
    %0 = vector.load %arg2[%c0, %c0_0] : memref<4x256xbf16, #tpu.memory_space<vmem>>, vector<4x256xbf16>
    %c0_1 = arith.constant 0 : index
    %c0_2 = arith.constant 0 : index
    %1 = vector.load %arg1[%c0_1, %c0_2] : memref<256x128xbf16, #tpu.memory_space<vmem>>, vector<256x128xbf16>
    %cst = arith.constant dense<0.000000e+00> : vector<4x128xf32>
    %2 = tpu.matmul %0, %1, %cst {dimension_numbers = #tpu.dot_dimension_numbers<[1], [0], [0], [1], [0, 0, 1, 1], [], []>} : vector<4x256xbf16>, vector<256x128xbf16>, vector<4x128xf32> -> vector<4x128xf32>
    %c0_3 = arith.constant 0 : index
    %c0_4 = arith.constant 0 : index
    %3 = vector.load %arg3[%c0_3, %c0_4] : memref<4x1xf32, #tpu.memory_space<vmem>>, vector<4x1xf32>
    %4 = vector.broadcast %3 : vector<4x1xf32> to vector<4x128xf32>
    %5 = arith.addf %2, %4 : vector<4x128xf32>
    %c0_5 = arith.constant 0 : index
    %6 = memref.load %arg4[%c0_5] : memref<1xf32, #tpu.memory_space<smem>>
    %cst_6 = arith.constant 0.000000e+00 : f32
    %7 = vector.broadcast %cst_6 : f32 to vector<4x128xf32>
    %8 = arith.cmpf oge, %5, %7 : vector<4x128xf32>
    %9 = vector.broadcast %6 : f32 to vector<4x128xf32>
    %10 = arith.mulf %9, %5 : vector<4x128xf32>
    %11 = arith.select %8, %5, %10 : vector<4x128xi1>, vector<4x128xf32>
    %c0_7 = arith.constant 0 : index
    %c0_8 = arith.constant 0 : index
    %12 = vector.load %arg5[%c0_7, %c0_8] : memref<4x128xf32, #tpu.memory_space<vmem>>, vector<4x128xf32>
    %cst_9 = arith.constant -1.000000e+00 : f32
    %13 = vector.broadcast %cst_9 : f32 to vector<4x128xf32>
    %14 = arith.mulf %13, %12 : vector<4x128xf32>
    %15 = arith.addf %11, %14 : vector<4x128xf32>
    %c0_10 = arith.constant 0 : index
    %c0_11 = arith.constant 0 : index
    %16 = vector.load %arg6[%c0_10, %c0_11] : memref<4x128xf32, #tpu.memory_space<vmem>>, vector<4x128xf32>
    tpu.vector_store %arg6[%c0_10, %c0_11], %15 {strides = array<i32>} : memref<4x128xf32, #tpu.memory_space<vmem>>, vector<4x128xf32>,
    return
  }
  func.func @transform_0(%arg0: i32) -> (i32, i32) {
    %c0_i32 = arith.constant 0 : i32
    %c0_i32_0 = arith.constant 0 : i32
    return %c0_i32, %arg0 : i32, i32
  }
  func.func @transform_1(%arg0: i32) -> (i32, i32) {
    %c0_i32 = arith.constant 0 : i32
    %c0_i32_0 = arith.constant 0 : i32
    %c0_i32_1 = arith.constant 0 : i32
    return %c0_i32, %c0_i32_0 : i32, i32
  }
  func.func @transform_2(%arg0: i32) -> (i32, i32) {
    %c0_i32 = arith.constant 0 : i32
    %c0_i32_0 = arith.constant 0 : i32
    %c0_i32_1 = arith.constant 0 : i32
    return %c0_i32, %c0_i32_0 : i32, i32
  }
  func.func @transform_3(%arg0: i32) -> i32 {
    %c0_i32 = arith.constant 0 : i32
    %c0_i32_0 = arith.constant 0 : i32
    return %c0_i32 : i32
  }
  func.func @transform_4(%arg0: i32) -> (i32, i32) {
    %c0_i32 = arith.constant 0 : i32
    %c0_i32_0 = arith.constant 0 : i32
    return %c0_i32, %arg0 : i32, i32
  }
  func.func @transform_5(%arg0: i32) -> (i32, i32) {
    %c0_i32 = arith.constant 0 : i32
    %c0_i32_0 = arith.constant 0 : i32
    return %c0_i32, %arg0 : i32, i32
  }
}

module attributes {stable_mosaic.version = 11 : i64} {
  func.func @_mm_bias_prelu_res_kernel(%arg0: i32, %arg1: memref<16x256xbf16, #tpu.memory_space<vmem>>, %arg2: memref<64x16xbf16, #tpu.memory_space<vmem>>, %arg3: memref<64x1xf32, #tpu.memory_space<vmem>>, %arg4: memref<1xf32, #tpu.memory_space<smem>>, %arg5: memref<64x256xf32, #tpu.memory_space<vmem>>, %arg6: memref<64x256xf32, #tpu.memory_space<vmem>>) attributes {dimension_semantics = [#tpu.dimension_semantics<parallel>], iteration_bounds = array<i64: 1>, scalar_prefetch = 0 : i64, scratch_operands = 0 : i64, tpu.core_type = #tpu.core_type<tc>, window_params = [{transform_indices = @transform_0, window_bounds = array<i64: 16, 256>}, {pipeline_mode = #tpu.pipeline_mode<synchronous>, transform_indices = @transform_1, window_bounds = array<i64: 64, 16>}, {pipeline_mode = #tpu.pipeline_mode<synchronous>, transform_indices = @transform_2, window_bounds = array<i64: 64, 1>}, {transform_indices = @transform_3, window_bounds = array<i64: 1>}, {transform_indices = @transform_4, window_bounds = array<i64: 64, 256>}, {transform_indices = @transform_5, window_bounds = array<i64: 64, 256>}]} {
    %c0 = arith.constant 0 : index
    %c0_0 = arith.constant 0 : index
    %0 = vector.load %arg2[%c0, %c0_0] : memref<64x16xbf16, #tpu.memory_space<vmem>>, vector<64x16xbf16>
    %c0_1 = arith.constant 0 : index
    %c0_2 = arith.constant 0 : index
    %1 = vector.load %arg1[%c0_1, %c0_2] : memref<16x256xbf16, #tpu.memory_space<vmem>>, vector<16x256xbf16>
    %cst = arith.constant dense<0.000000e+00> : vector<64x256xf32>
    %2 = tpu.matmul %0, %1, %cst {dimension_numbers = #tpu.dot_dimension_numbers<[1], [0], [0], [1], [0, 0, 1, 1], [], []>} : vector<64x16xbf16>, vector<16x256xbf16>, vector<64x256xf32> -> vector<64x256xf32>
    %c0_3 = arith.constant 0 : index
    %c0_4 = arith.constant 0 : index
    %3 = vector.load %arg3[%c0_3, %c0_4] : memref<64x1xf32, #tpu.memory_space<vmem>>, vector<64x1xf32>
    %4 = vector.broadcast %3 : vector<64x1xf32> to vector<64x256xf32>
    %5 = arith.addf %2, %4 : vector<64x256xf32>
    %c0_5 = arith.constant 0 : index
    %6 = memref.load %arg4[%c0_5] : memref<1xf32, #tpu.memory_space<smem>>
    %cst_6 = arith.constant 0.000000e+00 : f32
    %7 = vector.broadcast %cst_6 : f32 to vector<64x256xf32>
    %8 = arith.cmpf oge, %5, %7 : vector<64x256xf32>
    %9 = vector.broadcast %6 : f32 to vector<64x256xf32>
    %10 = arith.mulf %9, %5 : vector<64x256xf32>
    %11 = arith.select %8, %5, %10 : vector<64x256xi1>, vector<64x256xf32>
    %c0_7 = arith.constant 0 : index
    %c0_8 = arith.constant 0 : index
    %12 = vector.load %arg5[%c0_7, %c0_8] : memref<64x256xf32, #tpu.memory_space<vmem>>, vector<64x256xf32>
    %cst_9 = arith.constant 1.000000e+00 : f32
    %13 = vector.broadcast %cst_9 : f32 to vector<64x256xf32>
    %14 = arith.mulf %13, %12 : vector<64x256xf32>
    %15 = arith.addf %11, %14 : vector<64x256xf32>
    %c0_10 = arith.constant 0 : index
    %c0_11 = arith.constant 0 : index
    %16 = vector.load %arg6[%c0_10, %c0_11] : memref<64x256xf32, #tpu.memory_space<vmem>>, vector<64x256xf32>
    tpu.vector_store %arg6[%c0_10, %c0_11], %15 {strides = array<i32>} : memref<64x256xf32, #tpu.memory_space<vmem>>, vector<64x256xf32>,
    return
  }
  func.func @transform_0(%arg0: i32) -> (i32, i32) {
    %c0_i32 = arith.constant 0 : i32
    %c0_i32_0 = arith.constant 0 : i32
    return %c0_i32, %arg0 : i32, i32
  }
  func.func @transform_1(%arg0: i32) -> (i32, i32) {
    %c0_i32 = arith.constant 0 : i32
    %c0_i32_0 = arith.constant 0 : i32
    %c0_i32_1 = arith.constant 0 : i32
    return %c0_i32, %c0_i32_0 : i32, i32
  }
  func.func @transform_2(%arg0: i32) -> (i32, i32) {
    %c0_i32 = arith.constant 0 : i32
    %c0_i32_0 = arith.constant 0 : i32
    %c0_i32_1 = arith.constant 0 : i32
    return %c0_i32, %c0_i32_0 : i32, i32
  }
  func.func @transform_3(%arg0: i32) -> i32 {
    %c0_i32 = arith.constant 0 : i32
    %c0_i32_0 = arith.constant 0 : i32
    return %c0_i32 : i32
  }
  func.func @transform_4(%arg0: i32) -> (i32, i32) {
    %c0_i32 = arith.constant 0 : i32
    %c0_i32_0 = arith.constant 0 : i32
    return %c0_i32, %arg0 : i32, i32
  }
  func.func @transform_5(%arg0: i32) -> (i32, i32) {
    %c0_i32 = arith.constant 0 : i32
    %c0_i32_0 = arith.constant 0 : i32
    return %c0_i32, %arg0 : i32, i32
  }
}

</mosaic_0001>

<bundles_post_ra>
// kernel: tile.10
= control target key start
LH: loop header
LB: loop body
LE: loop exit
PB: predicated region body
PF: predicated region fallthrough
CT: control target
= control target key end

     0   :  { %s28_s0 = inlined_call_operand.vmem [shape: f32[4], index: 0, kind: input, shape index: {}]   ;;  %s29_s1 = inlined_call_operand.vmem [shape: f32[16,4], index: 1, kind: output, shape index: {}]  }
   0x1   :  { %v4_v0 = vld [vmem:[%s28_s0] ss:$0 sm:$0xff] }
   0x2   :  { %5 = vst [vmem:[%s29_s1] sm:$0xff] %v4_v0  ;;  %8 = vst [vmem:[%s29_s1 + $0x8] sm:$0xff] %v4_v0 }

// kernel: tile.0
= control target key start
LH: loop header
LB: loop body
LE: loop exit
PB: predicated region body
PF: predicated region fallthrough
CT: control target
= control target key end

     0   :  { %vm3_vm0 = vcmask 7168   ;;  %s64_s10 = smov 127   ;;  %s65_s15 = smov 125   ;;  %s114_s0 = inlined_call_operand.vmem [shape: f32[16,4], index: 0, kind: input, shape index: {}]   ;;  %s115_s1 = inlined_call_operand.vmem [shape: f32[64,1], index: 1, kind: output, shape index: {}]  }
   0x1   :  { %v23_v0 = vld [vmem:[%s114_s0] sm:$0xff]   ;;  %v49_v1 = vld [vmem:[%s114_s0 + $0x8] sm:$0xff]   ;;  %s63_s0 = smov 126  }
   0x2   :  { %24 = vrot.lane.b32.xlu1 %v23_v0, %s63_s0  ;;  %11 = vrot.lane.b32.xlu0 %v23_v0, %s64_s10  ;;  %4 = vst.msk [vmem:[%s115_s1] ss:$4 sm:$0xff] %vm3_vm0, %v23_v0   ;;  %50 = vst.msk [vmem:[%s115_s1 + $0x20] ss:$4 sm:$0xff] %vm3_vm0, %v49_v1  }
   0x6   :  { %31 = vrot.lane.b32.xlu1 %v49_v1, %s63_s0  ;;  %18 = vrot.lane.b32.xlu0 %v49_v1, %s64_s10 }
   0xa   :  { %44 = vrot.lane.b32.xlu1 %v49_v1, %s65_s15  ;;  %37 = vrot.lane.b32.xlu0 %v23_v0, %s65_s15 }
  0x74   :  { %v25_v2 = vpop.permute.xlu1 %24   ;;  %v12_v3 = vpop.permute.xlu0 %11  }
  0x75   :  { %54 = vst.msk [vmem:[%s115_s1 + $0x2] ss:$4 sm:$0xff] %vm3_vm0, %v25_v2   ;;  %51 = vst.msk [vmem:[%s115_s1 + $0x1] ss:$4 sm:$0xff] %vm3_vm0, %v12_v3  }
  0x78   :  { %v32_v4 = vpop.permute.xlu1 %31   ;;  %v19_v5 = vpop.permute.xlu0 %18  }
  0x79   :  { %56 = vst.msk [vmem:[%s115_s1 + $0x22] ss:$4 sm:$0xff] %vm3_vm0, %v32_v4   ;;  %53 = vst.msk [vmem:[%s115_s1 + $0x21] ss:$4 sm:$0xff] %vm3_vm0, %v19_v5  }
  0x7c   :  { %v45_v6 = vpop.permute.xlu1 %44   ;;  %v38_v7 = vpop.permute.xlu0 %37  }
  0x7d   :  { %59 = vst.msk [vmem:[%s115_s1 + $0x23] ss:$4 sm:$0xff] %vm3_vm0, %v45_v6   ;;  %57 = vst.msk [vmem:[%s115_s1 + $0x3] ss:$4 sm:$0xff] %vm3_vm0, %v38_v7  }

// kernel: _lambda_.3
= control target key start
LH: loop header
LB: loop body
LE: loop exit
PB: predicated region body
PF: predicated region fallthrough
CT: control target
= control target key end

     0   :  { %v285_v1 = vmov 0   ;;  %vm107_vm0 = vcmask 130048   ;;  %s430_s0 = inlined_call_operand.vmem [shape: bf16[16,256], index: 0, kind: input, shape index: {}]   ;;  %s431_s1 = inlined_call_operand.vmem [shape: bf16[64,16], index: 1, kind: input, shape index: {}]   ;;  %s432_s2 = inlined_call_operand.vmem [shape: f32[64,1], index: 2, kind: input, shape index: {}]   ;;  %s433_s3 = inlined_call_operand.<no memory space> [shape: f32[1], index: 3, kind: input, shape index: {}]   ;;  %s434_s4 = inlined_call_operand.vmem [shape: f32[64,256], index: 4, kind: output, shape index: {}]  }
   0x1   :  { %v278_v0 = vld [vmem:[%s430_s0 + $0x4] ss:$8 sps:$4 sm:$0xff]   ;;  %152 = vmatprep.mubr.bf16.mxu0 %v285_v1  ;;  %172 = vmatprep.mubr.bf16.mxu1 %v285_v1  ;;  %v280_v2 = vld [vmem:[%s430_s0] ss:$8 sps:$4 sm:$0xff]   ;;  %v282_v4 = vld [vmem:[%s431_s1 + $0x10] sm:$0xff]   ;;  %v362_v21 = vstv %s433_s3 }
   0x2   :  { %277 = vset.pattern.permute.xlu1 %v285_v1  ;;  %276 = vset.pattern.permute.xlu0 %v285_v1  ;;  %v281_v3 = vld [vmem:[%s431_s1] sm:$0xff]   ;;  %v31_v5 = vld [vmem:[%s432_s2 + $0x10] sm:$0xff]  ;;  %v32_v7 = vld [vmem:[%s432_s2 + $0x18] sm:$0xff] }
   0x3   :  { %120 = vmatprep.subr.bf16.mxu0 %v278_v0  ;;  %273 = vmatprep.subr.bf16.mxu1 %v278_v0  ;;  %v29_v6 = vld [vmem:[%s432_s2] sm:$0xff]  ;;  %v30_v8 = vld [vmem:[%s432_s2 + $0x8] sm:$0xff]  ;;  %v284_v10 = vld [vmem:[%s431_s1 + $0x18] sm:$0xff]  }
   0x4   :  { %121 = vmatpush1.bf16.msra.mxu0 %v280_v2  ;;  %274 = vmatpush1.bf16.msra.mxu1 %v280_v2  ;;  %v283_v9 = vld [vmem:[%s431_s1 + $0x8] sm:$0xff]   ;;  %v33_v12 = vld [vmem:[%s432_s2 + $0x20] sm:$0xff]  ;;  %v36_v13 = vld [vmem:[%s432_s2 + $0x38] sm:$0xff] }
   0x5   :  { %49 = vperm.xlu1 %277, %v31_v5   ;;  %39 = vperm.xlu0 %276, %v29_v6   ;;  %v34_v11 = vld [vmem:[%s432_s2 + $0x28] sm:$0xff]  ;;  %v35_v14 = vld [vmem:[%s432_s2 + $0x30] sm:$0xff] }
   0x7   :  { %269 = vmatmul.mubr.msk.bf16.vlgmr.msra.gmra.mrb[0].mxu0 %vm107_vm0, %v281_v3  ;;  %271 = vmatmul.mubr.msk.bf16.vlgmr.msra.gmra.mrb[0].mxu1 %vm107_vm0, %v282_v4 }
   0x8   :  { %162 = vmatprep.mubr.bf16.mxu0 %v285_v1  ;;  %182 = vmatprep.mubr.bf16.mxu1 %v285_v1 }
   0x9   :  { %54 = vperm.xlu1 %277, %v32_v7   ;;  %44 = vperm.xlu0 %276, %v30_v8  }
   0xd   :  { %64 = vperm.xlu1 %277, %v34_v11   ;;  %59 = vperm.xlu0 %276, %v33_v12  }
   0xf   :  { %270 = vmatmul.mubr.msk.bf16.gmra.mrb[4].mxu0 %vm107_vm0, %v283_v9  ;;  %272 = vmatmul.mubr.msk.bf16.gmra.mrb[4].mxu1 %vm107_vm0, %v284_v10 }
  0x11   :  { %74 = vperm.xlu1 %277, %v36_v13   ;;  %69 = vperm.xlu0 %276, %v35_v14  }
  0x84   :  { %v40_v15 = vpop.permute.xlu0 %39  ;;  %v50_v16 = vpop.permute.xlu1 %49 }
  0x88   :  { %v45_v17 = vpop.permute.xlu0 %44  ;;  %v357_v18 = vpop.permute.xlu1 %54 }
  0x8c   :  { %v60_v19 = vpop.permute.xlu0 %59  ;;  %v65_v35 = vpop.permute.xlu1 %64 }
  0x90   :  { %v70_v46 = vpop.permute.xlu0 %69  ;;  %v75_v5 = vpop.permute.xlu1 %74 }
  0xda   :  { %v154_v20 = vpop.f32.mrb[0].mxu0  ;;  %v174_v22 = vpop.f32.mrb[0].mxu1 }
  0xdb   :  { %v155_v23 = vadd.f32 %v154_v20, %v40_v15  ;;  %v175_v24 = vadd.f32 %v174_v22, %v60_v19  ;;  %v156_v25 = vpop.f32.mrb[1].mxu0  ;;  %v176_v26 = vpop.f32.mrb[1].mxu1 }
  0xdc   :  { %v157_v27 = vadd.f32 %v156_v25, %v40_v15  ;;  %v177_v28 = vadd.f32 %v176_v26, %v60_v19  ;;  %v158_v29 = vpop.f32.mrb[2].mxu0  ;;  %v178_v30 = vpop.f32.mrb[2].mxu1 }
  0xdd   :  { %vm194_vm1 = vcmp.ge.f32.partialorder %v155_v23, 0.0  ;;  %v211_v31 = vmul.f32 %v362_v21, %v155_v23  ;;  %vm202_vm2 = vcmp.ge.f32.partialorder %v175_v24, 0.0  ;;  %v219_v32 = vmul.f32 %v362_v21, %v175_v24  ;;  %v160_v33 = vpop.f32.mrb[3].mxu0  ;;  %v180_v34 = vpop.f32.mrb[3].mxu1 }
  0xde   :  { %vm195_vm3 = vcmp.ge.f32.partialorder %v157_v27, 0.0  ;;  %v212_v36 = vmul.f32 %v362_v21, %v157_v27  ;;  %vm203_vm4 = vcmp.ge.f32.partialorder %v177_v28, 0.0  ;;  %v220_v37 = vmul.f32 %v362_v21, %v177_v28 }
  0xdf   :  { %v227_v38 = vsel %vm194_vm1, %v155_v23, %v211_v31  ;;  %v235_v39 = vsel %vm202_vm2, %v175_v24, %v219_v32  ;;  %v159_v40 = vadd.f32 %v158_v29, %v45_v17  ;;  %v179_v41 = vadd.f32 %v178_v30, %v65_v35 }
  0xe0   :  { %243 = vst [vmem:[%s434_s4] sm:$0xff] %v227_v38  ;;  %251 = vst [vmem:[%s434_s4 + $0x40] sm:$0xff] %v235_v39  ;;  %v228_v42 = vsel %vm195_vm3, %v157_v27, %v212_v36  ;;  %v236_v43 = vsel %vm203_vm4, %v177_v28, %v220_v37  ;;  %v161_v44 = vadd.f32 %v160_v33, %v45_v17 }
  0xe1   :  { %v181_v45 = vadd.f32 %v180_v34, %v65_v35  ;;  %244 = vst [vmem:[%s434_s4 + $0x8] sm:$0xff] %v228_v42  ;;  %252 = vst [vmem:[%s434_s4 + $0x48] sm:$0xff] %v236_v43  ;;  %vm196_vm5 = vcmp.ge.f32.partialorder %v159_v40, 0.0  ;;  %v213_v47 = vmul.f32 %v362_v21, %v159_v40  ;;  %vm204_vm6 = vcmp.ge.f32.partialorder %v179_v41, 0.0 }
  0xe2   :  { %v221_v48 = vmul.f32 %v362_v21, %v179_v41  ;;  %vm197_vm7 = vcmp.ge.f32.partialorder %v161_v44, 0.0  ;;  %v214_v49 = vmul.f32 %v362_v21, %v161_v44  ;;  %v164_v51 = vpop.f32.mrb[4].mxu0  ;;  %v184_v52 = vpop.f32.mrb[4].mxu1 }
  0xe3   :  { %vm205_vm8 = vcmp.ge.f32.partialorder %v181_v45, 0.0  ;;  %v222_v50 = vmul.f32 %v362_v21, %v181_v45  ;;  %v229_v53 = vsel %vm196_vm5, %v159_v40, %v213_v47  ;;  %v165_v55 = vadd.f32 %v164_v51, %v50_v16  ;;  %v166_v57 = vpop.f32.mrb[5].mxu0  ;;  %v186_v58 = vpop.f32.mrb[5].mxu1 }
  0xe4   :  { %v237_v54 = vsel %vm204_vm6, %v179_v41, %v221_v48  ;;  %v185_v56 = vadd.f32 %v184_v52, %v70_v46  ;;  %245 = vst [vmem:[%s434_s4 + $0x10] sm:$0xff] %v229_v53  ;;  %v230_v59 = vsel %vm197_vm7, %v161_v44, %v214_v49  ;;  %v167_v61 = vadd.f32 %v166_v57, %v50_v16  ;;  %v168_v63 = vpop.f32.mrb[6].mxu0  ;;  %v188_v0 = vpop.f32.mrb[6].mxu1 }
  0xe5   :  { %253 = vst [vmem:[%s434_s4 + $0x50] sm:$0xff] %v237_v54  ;;  %v238_v60 = vsel %vm205_vm8, %v181_v45, %v222_v50  ;;  %v187_v62 = vadd.f32 %v186_v58, %v70_v46  ;;  %246 = vst [vmem:[%s434_s4 + $0x18] sm:$0xff] %v230_v59  ;;  %vm198_vm9 = vcmp.ge.f32.partialorder %v165_v55, 0.0  ;;  %v215_v1 = vmul.f32 %v362_v21, %v165_v55  ;;  %v170_v3 = vpop.f32.mrb[7].mxu0  ;;  %v190_v4 = vpop.f32.mrb[7].mxu1 }
  0xe6   :  { %254 = vst [vmem:[%s434_s4 + $0x58] sm:$0xff] %v238_v60  ;;  %vm206_vm10 = vcmp.ge.f32.partialorder %v185_v56, 0.0  ;;  %v223_v2 = vmul.f32 %v362_v21, %v185_v56  ;;  %vm199_vm11 = vcmp.ge.f32.partialorder %v167_v61, 0.0  ;;  %v216_v6 = vmul.f32 %v362_v21, %v167_v61 }
  0xe7   :  { %vm207_vm12 = vcmp.ge.f32.partialorder %v187_v62, 0.0  ;;  %v224_v7 = vmul.f32 %v362_v21, %v187_v62  ;;  %v231_v8 = vsel %vm198_vm9, %v165_v55, %v215_v1  ;;  %v169_v10 = vadd.f32 %v168_v63, %v357_v18 }
  0xe8   :  { %v239_v9 = vsel %vm206_vm10, %v185_v56, %v223_v2  ;;  %v189_v11 = vadd.f32 %v188_v0, %v75_v5  ;;  %247 = vst [vmem:[%s434_s4 + $0x20] sm:$0xff] %v231_v8  ;;  %v232_v12 = vsel %vm199_vm11, %v167_v61, %v216_v6  ;;  %v171_v14 = vadd.f32 %v170_v3, %v357_v18 }
  0xe9   :  { %255 = vst [vmem:[%s434_s4 + $0x60] sm:$0xff] %v239_v9  ;;  %v240_v13 = vsel %vm207_vm12, %v187_v62, %v224_v7  ;;  %v191_v15 = vadd.f32 %v190_v4, %v75_v5  ;;  %248 = vst [vmem:[%s434_s4 + $0x28] sm:$0xff] %v232_v12  ;;  %vm200_vm13 = vcmp.ge.f32.partialorder %v169_v10, 0.0  ;;  %v217_v16 = vmul.f32 %v362_v21, %v169_v10 }
  0xea   :  { %256 = vst [vmem:[%s434_s4 + $0x68] sm:$0xff] %v240_v13  ;;  %vm208_vm14 = vcmp.ge.f32.partialorder %v189_v11, 0.0  ;;  %v225_v17 = vmul.f32 %v362_v21, %v189_v11  ;;  %vm201_vm15 = vcmp.ge.f32.partialorder %v171_v14, 0.0  ;;  %v218_v19 = vmul.f32 %v362_v21, %v171_v14 }
  0xeb   :  { %vm209_vm0 = vcmp.ge.f32.partialorder %v191_v15, 0.0  ;;  %v226_v18 = vmul.f32 %v362_v21, %v191_v15  ;;  %v233_v20 = vsel %vm200_vm13, %v169_v10, %v217_v16 }
  0xec   :  { %v241_v22 = vsel %vm208_vm14, %v189_v11, %v225_v17  ;;  %249 = vst [vmem:[%s434_s4 + $0x30] sm:$0xff] %v233_v20  ;;  %v234_v23 = vsel %vm201_vm15, %v171_v14, %v218_v19 }
  0xed   :  { %257 = vst [vmem:[%s434_s4 + $0x70] sm:$0xff] %v241_v22  ;;  %v242_v24 = vsel %vm209_vm0, %v191_v15, %v226_v18  ;;  %250 = vst [vmem:[%s434_s4 + $0x38] sm:$0xff] %v234_v23 }
  0xee   :  { %258 = vst [vmem:[%s434_s4 + $0x78] sm:$0xff] %v242_v24 }

// kernel: _lambda_.4
= control target key start
LH: loop header
LB: loop body
LE: loop exit
PB: predicated region body
PF: predicated region fallthrough
CT: control target
= control target key end

     0   :  { %v278_v1 = vmov 0   ;;  %s372_s0 = inlined_call_operand.vmem [shape: bf16[256,128], index: 0, kind: input, shape index: {}]   ;;  %s373_s1 = inlined_call_operand.vmem [shape: bf16[4,256], index: 1, kind: input, shape index: {}]   ;;  %s374_s2 = inlined_call_operand.vmem [shape: f32[4,1], index: 2, kind: input, shape index: {}]   ;;  %s375_s4 = inlined_call_operand.vmem [shape: f32[4,128], index: 4, kind: input, shape index: {}]   ;;  %s376_s3 = inlined_call_operand.<no memory space> [shape: f32[1], index: 3, kind: input, shape index: {}]   ;;  %s377_s5 = inlined_call_operand.vmem [shape: f32[4,128], index: 5, kind: output, shape index: {}]  }
   0x1   :  { %v262_v0 = vld [vmem:[%s372_s0 + $0x40] sm:$0xff]   ;;  %261 = vset.pattern.permute.xlu0 %v278_v1  ;;  %v264_v3 = vld [vmem:[%s372_s0 + $0x48] sm:$0xff]   ;;  %v266_v5 = vld [vmem:[%s372_s0 + $0x50] sm:$0xff]   ;;  %v210_v26 = vstv %s376_s3 }
   0x2   :  { %v263_v2 = vld [vmem:[%s372_s0] sm:$0xff]   ;;  %238 = vmatprep.subr.bf16.mxu0 %v262_v0  ;;  %v265_v4 = vld [vmem:[%s372_s0 + $0x8] sm:$0xff]   ;;  %v267_v6 = vld [vmem:[%s372_s0 + $0x10] sm:$0xff]  }
   0x3   :  { %239 = vmatpush3.bf16.msra.mxu0 %v263_v2  ;;  %v268_v7 = vld [vmem:[%s372_s0 + $0x58] sm:$0xff]   ;;  %v270_v9 = vld [vmem:[%s372_s0 + $0x60] sm:$0xff]   ;;  %v272_v11 = vld [vmem:[%s372_s0 + $0x68] sm:$0xff]  }
   0x4   :  { %240 = vmatprep.subr.bf16.mxu0 %v264_v3  ;;  %v269_v8 = vld [vmem:[%s372_s0 + $0x18] sm:$0xff]   ;;  %v271_v10 = vld [vmem:[%s372_s0 + $0x20] sm:$0xff]   ;;  %v273_v15 = vld [vmem:[%s372_s0 + $0x28] sm:$0xff]  }
   0x5   :  { %v221_v12 = vld.sshfl [vmem:[%s373_s1] sm:$0x33 pattern:$0x76325410]  ;;  %v274_v16 = vld [vmem:[%s372_s0 + $0x70] sm:$0xff]   ;;  %v276_v18 = vld [vmem:[%s372_s0 + $0x78] sm:$0xff]  }
   0x6   :  { %v55_v13 = vld [vmem:[%s374_s2] sm:$0xf]  ;;  %v69_v14 = vcombine.high %v221_v12, %v221_v12  ;;  %v275_v17 = vld [vmem:[%s372_s0 + $0x30] sm:$0xff]   ;;  %v277_v19 = vld [vmem:[%s372_s0 + $0x38] sm:$0xff]  }
   0x7   :  { %241 = vmatpush3.bf16.msra.mxu0 %v265_v4  ;;  %58 = vperm.xlu0 %261, %v55_v13   ;;  %v213_v25 = vld [vmem:[%s375_s4] sm:$0xf] }
   0x8   :  { %242 = vmatprep.subr.bf16.mxu0 %v266_v5  ;;  %200 = vmatprep.mubr.bf16.mxu0 %v69_v14  ;;  %v214_v29 = vmul.f32 -1.0, %v213_v25 }
   0xb   :  { %243 = vmatpush3.bf16.msra.mxu0 %v267_v6 }
   0xc   :  { %244 = vmatprep.subr.bf16.mxu0 %v268_v7 }
   0xf   :  { %245 = vmatpush3.bf16.msra.mxu0 %v269_v8 }
  0x10   :  { %246 = vmatprep.subr.bf16.mxu0 %v270_v9 }
  0x13   :  { %247 = vmatpush3.bf16.msra.mxu0 %v271_v10 }
  0x14   :  { %248 = vmatprep.subr.bf16.mxu0 %v272_v11 }
  0x17   :  { %249 = vmatpush3.bf16.msra.mxu0 %v273_v15 }
  0x18   :  { %250 = vmatprep.subr.bf16.mxu0 %v274_v16 }
  0x1b   :  { %251 = vmatpush3.bf16.msra.mxu0 %v275_v17 }
  0x1c   :  { %252 = vmatprep.subr.bf16.mxu0 %v276_v18 }
  0x1f   :  { %253 = vmatpush3.bf16.msra.mxu0 %v277_v19 }
  0x22   :  { %201 = vmatmul.mubr.bf16.vlgmr.msra.gmra.mrb[0].mxu0 %v221_v12 }
  0x86   :  { %v59_v22 = vpop.permute.xlu0 %58 }
  0xf5   :  { %v254_v20 = vpop.f32.mrb[0].mxu0 }
  0xf6   :  { %v255_v21 = vpop.f32.mrb[1].mxu0 }
  0xf7   :  { %v256_v23 = vadd.f32 %v255_v21, %v254_v20  ;;  %v257_v24 = vpop.f32.mrb[2].mxu0 }
  0xf8   :  { %v258_v27 = vpop.f32.mrb[3].mxu0 }
  0xf9   :  { %v203_v28 = vadd.f32 %v256_v23, %v59_v22 }
  0xfb   :  { %vm209_vm0 = vcmp.ge.f32.partialorder %v203_v28, 0.0  ;;  %v211_v30 = vmul.f32 %v210_v26, %v203_v28 }
  0xfd   :  { %v212_v31 = vsel %vm209_vm0, %v203_v28, %v211_v30 }
  0xfe   :  { %v215_v32 = vadd.f32 %v214_v29, %v212_v31 }
 0x100   :  { %216 = vst [vmem:[%s377_s5] sm:$0xf] %v215_v32 }

// kernel: _lambda_.5
= control target key start
LH: loop header
LB: loop body
LE: loop exit
PB: predicated region body
PF: predicated region fallthrough
CT: control target
= control target key end

     0   :  { %v320_v1 = vmov 0   ;;  %vm110_vm0 = vcmask 130048   ;;  %s524_s0 = inlined_call_operand.vmem [shape: bf16[16,256], index: 0, kind: input, shape index: {}]   ;;  %s525_s1 = inlined_call_operand.vmem [shape: bf16[64,16], index: 1, kind: input, shape index: {}]   ;;  %s526_s2 = inlined_call_operand.vmem [shape: f32[64,1], index: 2, kind: input, shape index: {}]   ;;  %s527_s3 = inlined_call_operand.<no memory space> [shape: f32[1], index: 3, kind: input, shape index: {}]   ;;  %s528_s4 = inlined_call_operand.vmem [shape: f32[64,256], index: 4, kind: input, shape index: {}]   ;;  %s529_s5 = inlined_call_operand.vmem [shape: f32[64,256], index: 5, kind: output, shape index: {}]  }
   0x1   :  { %v313_v0 = vld [vmem:[%s524_s0 + $0x4] ss:$8 sps:$4 sm:$0xff]   ;;  %155 = vmatprep.mubr.bf16.mxu0 %v320_v1  ;;  %175 = vmatprep.mubr.bf16.mxu1 %v320_v1  ;;  %v315_v2 = vld [vmem:[%s524_s0] ss:$8 sps:$4 sm:$0xff]   ;;  %v317_v4 = vld [vmem:[%s525_s1 + $0x10] sm:$0xff]   ;;  %v404_v21 = vstv %s527_s3 }
   0x2   :  { %312 = vset.pattern.permute.xlu1 %v320_v1  ;;  %311 = vset.pattern.permute.xlu0 %v320_v1  ;;  %v316_v3 = vld [vmem:[%s525_s1] sm:$0xff]   ;;  %v34_v5 = vld [vmem:[%s526_s2 + $0x10] sm:$0xff]  ;;  %v35_v7 = vld [vmem:[%s526_s2 + $0x18] sm:$0xff] }
   0x3   :  { %123 = vmatprep.subr.bf16.mxu0 %v313_v0  ;;  %308 = vmatprep.subr.bf16.mxu1 %v313_v0  ;;  %v32_v6 = vld [vmem:[%s526_s2] sm:$0xff]  ;;  %v33_v8 = vld [vmem:[%s526_s2 + $0x8] sm:$0xff]  ;;  %v319_v10 = vld [vmem:[%s525_s1 + $0x18] sm:$0xff]  }
   0x4   :  { %124 = vmatpush1.bf16.msra.mxu0 %v315_v2  ;;  %309 = vmatpush1.bf16.msra.mxu1 %v315_v2  ;;  %v318_v9 = vld [vmem:[%s525_s1 + $0x8] sm:$0xff]   ;;  %v36_v12 = vld [vmem:[%s526_s2 + $0x20] sm:$0xff]  ;;  %v39_v13 = vld [vmem:[%s526_s2 + $0x38] sm:$0xff] }
   0x5   :  { %52 = vperm.xlu1 %312, %v34_v5   ;;  %42 = vperm.xlu0 %311, %v32_v6   ;;  %v37_v11 = vld [vmem:[%s526_s2 + $0x28] sm:$0xff]  ;;  %v38_v14 = vld [vmem:[%s526_s2 + $0x30] sm:$0xff]  ;;  %v246_v32 = vld [vmem:[%s528_s4] sm:$0xff] }
   0x6   :  { %v254_v34 = vld [vmem:[%s528_s4 + $0x40] sm:$0xff]  ;;  %v247_v39 = vld [vmem:[%s528_s4 + $0x8] sm:$0xff]  ;;  %v248_v54 = vld [vmem:[%s528_s4 + $0x10] sm:$0xff] }
   0x7   :  { %304 = vmatmul.mubr.msk.bf16.vlgmr.msra.gmra.mrb[0].mxu0 %vm110_vm0, %v316_v3  ;;  %306 = vmatmul.mubr.msk.bf16.vlgmr.msra.gmra.mrb[0].mxu1 %vm110_vm0, %v317_v4  ;;  %v255_v41 = vld [vmem:[%s528_s4 + $0x48] sm:$0xff]  ;;  %v256_v56 = vld [vmem:[%s528_s4 + $0x50] sm:$0xff]  ;;  %v249_v5 = vld [vmem:[%s528_s4 + $0x18] sm:$0xff] }
   0x8   :  { %165 = vmatprep.mubr.bf16.mxu0 %v320_v1  ;;  %185 = vmatprep.mubr.bf16.mxu1 %v320_v1 }
   0x9   :  { %57 = vperm.xlu1 %312, %v35_v7   ;;  %47 = vperm.xlu0 %311, %v33_v8  }
   0xd   :  { %67 = vperm.xlu1 %312, %v37_v11   ;;  %62 = vperm.xlu0 %311, %v36_v12  }
   0xf   :  { %305 = vmatmul.mubr.msk.bf16.gmra.mrb[4].mxu0 %vm110_vm0, %v318_v9  ;;  %307 = vmatmul.mubr.msk.bf16.gmra.mrb[4].mxu1 %vm110_vm0, %v319_v10  ;;  %v257_v10 = vld [vmem:[%s528_s4 + $0x58] sm:$0xff] }
  0x11   :  { %77 = vperm.xlu1 %312, %v39_v13   ;;  %72 = vperm.xlu0 %311, %v38_v14  }
  0x84   :  { %v43_v15 = vpop.permute.xlu0 %42  ;;  %v397_v16 = vpop.permute.xlu1 %52 }
  0x88   :  { %v48_v17 = vpop.permute.xlu0 %47  ;;  %v399_v18 = vpop.permute.xlu1 %57 }
  0x8c   :  { %v63_v19 = vpop.permute.xlu0 %62  ;;  %v68_v37 = vpop.permute.xlu1 %67 }
  0x90   :  { %v73_v50 = vpop.permute.xlu0 %72 }
  0xda   :  { %v157_v20 = vpop.f32.mrb[0].mxu0  ;;  %v177_v22 = vpop.f32.mrb[0].mxu1 }
  0xdb   :  { %v158_v23 = vadd.f32 %v157_v20, %v43_v15  ;;  %v178_v24 = vadd.f32 %v177_v22, %v63_v19  ;;  %v159_v25 = vpop.f32.mrb[1].mxu0  ;;  %v179_v26 = vpop.f32.mrb[1].mxu1 }
  0xdc   :  { %v160_v27 = vadd.f32 %v159_v25, %v43_v15  ;;  %v180_v28 = vadd.f32 %v179_v26, %v63_v19  ;;  %v161_v29 = vpop.f32.mrb[2].mxu0  ;;  %v181_v30 = vpop.f32.mrb[2].mxu1  ;;  %v250_v15 = vld [vmem:[%s528_s4 + $0x20] sm:$0xff] }
  0xdd   :  { %vm197_vm1 = vcmp.ge.f32.partialorder %v158_v23, 0.0  ;;  %v214_v31 = vmul.f32 %v404_v21, %v158_v23  ;;  %vm205_vm2 = vcmp.ge.f32.partialorder %v178_v24, 0.0  ;;  %v222_v33 = vmul.f32 %v404_v21, %v178_v24  ;;  %v163_v35 = vpop.f32.mrb[3].mxu0  ;;  %v183_v36 = vpop.f32.mrb[3].mxu1  ;;  %v258_v19 = vld [vmem:[%s528_s4 + $0x60] sm:$0xff] }
  0xde   :  { %vm198_vm3 = vcmp.ge.f32.partialorder %v160_v27, 0.0  ;;  %v215_v38 = vmul.f32 %v404_v21, %v160_v27  ;;  %vm206_vm4 = vcmp.ge.f32.partialorder %v180_v28, 0.0  ;;  %v223_v40 = vmul.f32 %v404_v21, %v180_v28 }
  0xdf   :  { %v230_v42 = vsel %vm197_vm1, %v158_v23, %v214_v31  ;;  %v238_v43 = vsel %vm205_vm2, %v178_v24, %v222_v33  ;;  %v162_v44 = vadd.f32 %v161_v29, %v48_v17  ;;  %v182_v45 = vadd.f32 %v181_v30, %v68_v37 }
  0xe0   :  { %v262_v46 = vadd.f32 %v246_v32, %v230_v42  ;;  %v270_v47 = vadd.f32 %v254_v34, %v238_v43  ;;  %v231_v48 = vsel %vm198_vm3, %v160_v27, %v215_v38  ;;  %v239_v49 = vsel %vm206_vm4, %v180_v28, %v223_v40  ;;  %v78_v32 = vpop.permute.xlu1 %77  ;;  %v259_v34 = vld [vmem:[%s528_s4 + $0x68] sm:$0xff] }
  0xe1   :  { %v263_v51 = vadd.f32 %v247_v39, %v231_v48  ;;  %v271_v52 = vadd.f32 %v255_v41, %v239_v49  ;;  %vm199_vm5 = vcmp.ge.f32.partialorder %v162_v44, 0.0  ;;  %v216_v53 = vmul.f32 %v404_v21, %v162_v44  ;;  %v253_v48 = vld [vmem:[%s528_s4 + $0x38] sm:$0xff] }
  0xe2   :  { %278 = vst [vmem:[%s529_s5] sm:$0xff] %v262_v46  ;;  %286 = vst [vmem:[%s529_s5 + $0x40] sm:$0xff] %v270_v47  ;;  %vm207_vm6 = vcmp.ge.f32.partialorder %v182_v45, 0.0  ;;  %v224_v55 = vmul.f32 %v404_v21, %v182_v45  ;;  %v164_v57 = vadd.f32 %v163_v35, %v48_v17  ;;  %v184_v58 = vadd.f32 %v183_v36, %v68_v37  ;;  %v167_v59 = vpop.f32.mrb[4].mxu0  ;;  %v187_v60 = vpop.f32.mrb[4].mxu1  ;;  %v252_v36 = vld [vmem:[%s528_s4 + $0x30] sm:$0xff] }
  0xe3   :  { %279 = vst [vmem:[%s529_s5 + $0x8] sm:$0xff] %v263_v51  ;;  %287 = vst [vmem:[%s529_s5 + $0x48] sm:$0xff] %v271_v52  ;;  %v232_v61 = vsel %vm199_vm5, %v162_v44, %v216_v53  ;;  %v168_v62 = vadd.f32 %v167_v59, %v397_v16  ;;  %v188_v63 = vadd.f32 %v187_v60, %v73_v50  ;;  %v169_v0 = vpop.f32.mrb[5].mxu0  ;;  %v189_v1 = vpop.f32.mrb[5].mxu1  ;;  %v260_v47 = vld [vmem:[%s528_s4 + $0x70] sm:$0xff] }
  0xe4   :  { %v264_v2 = vadd.f32 %v248_v54, %v232_v61  ;;  %v240_v3 = vsel %vm207_vm6, %v182_v45, %v224_v55  ;;  %vm200_vm7 = vcmp.ge.f32.partialorder %v164_v57, 0.0  ;;  %v217_v4 = vmul.f32 %v404_v21, %v164_v57  ;;  %v171_v6 = vpop.f32.mrb[6].mxu0  ;;  %v191_v7 = vpop.f32.mrb[6].mxu1 }
  0xe5   :  { %v272_v8 = vadd.f32 %v256_v56, %v240_v3  ;;  %vm208_vm8 = vcmp.ge.f32.partialorder %v184_v58, 0.0  ;;  %v225_v9 = vmul.f32 %v404_v21, %v184_v58  ;;  %vm201_vm9 = vcmp.ge.f32.partialorder %v168_v62, 0.0  ;;  %v173_v11 = vpop.f32.mrb[7].mxu0  ;;  %v193_v12 = vpop.f32.mrb[7].mxu1 }
  0xe6   :  { %280 = vst [vmem:[%s529_s5 + $0x10] sm:$0xff] %v264_v2  ;;  %v233_v13 = vsel %vm200_vm7, %v164_v57, %v217_v4  ;;  %v218_v14 = vmul.f32 %v404_v21, %v168_v62  ;;  %vm209_vm10 = vcmp.ge.f32.partialorder %v188_v63, 0.0  ;;  %v226_v17 = vmul.f32 %v404_v21, %v188_v63 }
  0xe7   :  { %288 = vst [vmem:[%s529_s5 + $0x50] sm:$0xff] %v272_v8  ;;  %v265_v20 = vadd.f32 %v249_v5, %v233_v13  ;;  %v241_v22 = vsel %vm208_vm8, %v184_v58, %v225_v9  ;;  %v170_v23 = vadd.f32 %v169_v0, %v397_v16  ;;  %v190_v24 = vadd.f32 %v189_v1, %v73_v50  ;;  %v251_v16 = vld [vmem:[%s528_s4 + $0x28] sm:$0xff]  ;;  %v261_v50 = vld [vmem:[%s528_s4 + $0x78] sm:$0xff] }
  0xe8   :  { %v273_v25 = vadd.f32 %v257_v10, %v241_v22  ;;  %v234_v26 = vsel %vm201_vm9, %v168_v62, %v218_v14  ;;  %v242_v27 = vsel %vm209_vm10, %v188_v63, %v226_v17  ;;  %v172_v28 = vadd.f32 %v171_v6, %v399_v18 }
  0xe9   :  { %281 = vst [vmem:[%s529_s5 + $0x18] sm:$0xff] %v265_v20  ;;  %v266_v29 = vadd.f32 %v250_v15, %v234_v26  ;;  %v274_v30 = vadd.f32 %v258_v19, %v242_v27  ;;  %vm202_vm11 = vcmp.ge.f32.partialorder %v170_v23, 0.0  ;;  %v219_v31 = vmul.f32 %v404_v21, %v170_v23 }
  0xea   :  { %289 = vst [vmem:[%s529_s5 + $0x58] sm:$0xff] %v273_v25  ;;  %vm210_vm12 = vcmp.ge.f32.partialorder %v190_v24, 0.0  ;;  %v227_v33 = vmul.f32 %v404_v21, %v190_v24  ;;  %vm203_vm13 = vcmp.ge.f32.partialorder %v172_v28, 0.0  ;;  %v220_v35 = vmul.f32 %v404_v21, %v172_v28 }
  0xeb   :  { %282 = vst [vmem:[%s529_s5 + $0x20] sm:$0xff] %v266_v29  ;;  %290 = vst [vmem:[%s529_s5 + $0x60] sm:$0xff] %v274_v30  ;;  %v235_v37 = vsel %vm202_vm11, %v170_v23, %v219_v31  ;;  %v192_v38 = vadd.f32 %v191_v7, %v78_v32  ;;  %v174_v39 = vadd.f32 %v173_v11, %v399_v18 }
  0xec   :  { %v194_v40 = vadd.f32 %v193_v12, %v78_v32  ;;  %v267_v41 = vadd.f32 %v251_v16, %v235_v37  ;;  %v243_v42 = vsel %vm210_vm12, %v190_v24, %v227_v33  ;;  %v236_v43 = vsel %vm203_vm13, %v172_v28, %v220_v35 }
  0xed   :  { %v275_v44 = vadd.f32 %v259_v34, %v243_v42  ;;  %v268_v45 = vadd.f32 %v252_v36, %v236_v43  ;;  %vm211_vm14 = vcmp.ge.f32.partialorder %v192_v38, 0.0  ;;  %v228_v46 = vmul.f32 %v404_v21, %v192_v38 }
  0xee   :  { %283 = vst [vmem:[%s529_s5 + $0x28] sm:$0xff] %v267_v41  ;;  %vm204_vm15 = vcmp.ge.f32.partialorder %v174_v39, 0.0  ;;  %v221_v18 = vmul.f32 %v404_v21, %v174_v39  ;;  %vm212_vm0 = vcmp.ge.f32.partialorder %v194_v40, 0.0  ;;  %v229_v49 = vmul.f32 %v404_v21, %v194_v40 }
  0xef   :  { %291 = vst [vmem:[%s529_s5 + $0x68] sm:$0xff] %v275_v44  ;;  %284 = vst [vmem:[%s529_s5 + $0x30] sm:$0xff] %v268_v45  ;;  %v244_v51 = vsel %vm211_vm14, %v192_v38, %v228_v46 }
  0xf0   :  { %v276_v52 = vadd.f32 %v260_v47, %v244_v51  ;;  %v237_v53 = vsel %vm204_vm15, %v174_v39, %v221_v18  ;;  %v245_v54 = vsel %vm212_vm0, %v194_v40, %v229_v49 }
  0xf1   :  { %v269_v55 = vadd.f32 %v253_v48, %v237_v53  ;;  %v277_v56 = vadd.f32 %v261_v50, %v245_v54 }
  0xf2   :  { %292 = vst [vmem:[%s529_s5 + $0x70] sm:$0xff] %v276_v52 }
  0xf3   :  { %285 = vst [vmem:[%s529_s5 + $0x38] sm:$0xff] %v269_v55  ;;  %293 = vst [vmem:[%s529_s5 + $0x78] sm:$0xff] %v277_v56 }

</bundles_post_ra>
